<compile_context>
chip_gen: v5e
topology: v5e:2x2
jax: 0.10.0
libtpu: 0.0.40
codegen_flags: <defaults>
</compile_context>

<pallas_src>
import jax
import jax.numpy as jnp
from jax.experimental import pallas as pl
from jax.experimental.pallas import tpu as pltpu


def shuffle_kernel(x_ref, p_ref, o_ref):
    # One MXU matmul per tile: exact permutation gather along the lane dim.
    o_ref[...] = jnp.dot(
        x_ref[...], p_ref[...], preferred_element_type=jnp.float32
    ).astype(o_ref.dtype)


def _permute_blocks_pallas(x2d, perm_mat, *, tm=2048):
    """y2d[m, j] = x2d[m, key[j]] via y2d = x2d @ perm_mat, tiled over rows."""
    M, D = x2d.shape
    # Row tile: full array when small (always layout-legal), else 2048 rows
    # (multiple of 8 sublanes; ~1.5 MiB/tile f32 at D=192 -> 2 in + 2 out
    # buffers + resident P stay far under the scoped-VMEM default on all of
    # v5e/v6e/v7x).  Ragged last tile is handled by cdiv + Pallas padding.
    TM = M if M <= tm else tm
    grid = (pl.cdiv(M, TM),)

    itemsize = jnp.dtype(x2d.dtype).itemsize
    cost = pl.CostEstimate(
        flops=2 * M * D * D,
        bytes_accessed=itemsize * (2 * M * D)
        + jnp.dtype(perm_mat.dtype).itemsize * D * D,
        transcendentals=0,
    )

    return pl.pallas_call(
        shuffle_kernel,
        out_shape=jax.ShapeDtypeStruct((M, D), x2d.dtype),
        grid=grid,
        in_specs=[
            pl.BlockSpec((TM, D), lambda i: (i, 0)),   # streamed row tiles
            pl.BlockSpec((D, D), lambda i: (0, 0)),    # P resident in VMEM
        ],
        out_specs=pl.BlockSpec((TM, D), lambda i: (i, 0)),
        compiler_params=pltpu.CompilerParams(
            dimension_semantics=("parallel",),          # megacore on v7x
        ),
        cost_estimate=cost,
    )(x2d, perm_mat)


class ShuffleJAX:
    """JAX/Pallas port of keydefense.Shuffle (forward pass only)."""

    def __init__(self, block_size, height, width, seed):
        assert height % block_size == 0 and width % block_size == 0, (
            "Image not divisible by block_size"
        )
        bs = block_size
        self.block_size = bs
        self.blocks_axis0 = height // bs
        self.blocks_axis1 = width // bs
        self.D = bs * bs * 3

        # generate_key: deterministic permutation of size D in the *reference*
        # (i, j, c) HWC intra-block order used by the PyTorch module.
        # TODO(synk): torch.randperm's exact stream is not reproducible in JAX;
        # jax.random.permutation with the same integer seed is used instead.
        self.key = jax.random.permutation(
            jax.random.PRNGKey(seed), jnp.arange(self.D, dtype=jnp.int32)
        )
        key_inv = jnp.argsort(self.key)

        # Fold the fixed intra-block layout reorder Q into P:
        # kernel layout orders block elements as (c, i, j); reference as (i, j, c).
        q = jnp.arange(self.D, dtype=jnp.int32)
        c = q // (bs * bs)
        i = (q % (bs * bs)) // bs
        j = q % bs
        q_to_r = (i * bs + j) * 3 + c          # kernel index -> reference index
        r_to_q = jnp.argsort(q_to_r)           # reference index -> kernel index

        key_enc = r_to_q[self.key[q_to_r]]     # folded encrypt permutation
        key_dec = r_to_q[key_inv[q_to_r]]      # folded decrypt permutation

        eye = jnp.eye(self.D, dtype=jnp.float32)
        # (X @ P)[:, j] = X[:, key[j]]  since P[i, j] = delta(i, key[j])
        self.P_enc = eye[:, key_enc]
        self.P_dec = eye[:, key_dec]

        # mean/std exist in the reference module but are unused in forward().
        self.mean = jnp.array([0.4914, 0.4822, 0.4465], dtype=jnp.float32)
        self.std = jnp.array([0.2470, 0.2435, 0.2616], dtype=jnp.float32)

    # --- layout glue: single transpose each way, (c, i, j) intra-block order ---
    def _segment_cij(self, X):
        # (N, 3, H, W) -> (M, D) with block elements ordered (c, i, j)
        N = X.shape[0]
        bs = self.block_size
        X = X.reshape(N, 3, self.blocks_axis0, bs, self.blocks_axis1, bs)
        X = jnp.transpose(X, (0, 2, 4, 1, 3, 5))   # (N, b0, b1, 3, bs, bs)
        return X.reshape(N * self.blocks_axis0 * self.blocks_axis1, self.D)

    def _integrate_cij(self, Y2d, N):
        # (M, D) -> (N, 3, H, W)
        bs = self.block_size
        Y = Y2d.reshape(N, self.blocks_axis0, self.blocks_axis1, 3, bs, bs)
        Y = jnp.transpose(Y, (0, 3, 1, 4, 2, 5))   # (N, 3, b0, bs, b1, bs)
        return Y.reshape(N, 3, self.blocks_axis0 * bs, self.blocks_axis1 * bs)

    def __call__(self, X, decrypt=False):
        N = X.shape[0]
        x2d = self._segment_cij(X)                            # (M, D)
        P = (self.P_dec if decrypt else self.P_enc).astype(X.dtype)
        y2d = _permute_blocks_pallas(x2d, P)                  # Pallas MXU perm
        return self._integrate_cij(y2d, N)


def _reference_forward(model, X, decrypt=False):
    """Pure-JAX reference reproducing the PyTorch module's math exactly
    (HWC-order segment, gather with `key`, integrate)."""
    N = X.shape[0]
    bs = model.block_size
    Xs = jnp.transpose(X, (0, 2, 3, 1))
    Xs = Xs.reshape(N, model.blocks_axis0, bs, model.blocks_axis1, bs, 3)
    Xs = jnp.transpose(Xs, (0, 1, 3, 2, 4, 5))
    Xs = Xs.reshape(N, model.blocks_axis0, model.blocks_axis1, model.D)
    key = jnp.argsort(model.key) if decrypt else model.key
    Xs = Xs[:, :, :, key]
    Xs = Xs.reshape(N, model.blocks_axis0, model.blocks_axis1, bs, bs, 3)
    Xs = jnp.transpose(Xs, (0, 1, 3, 2, 4, 5))
    Xs = Xs.reshape(N, model.blocks_axis0 * bs, model.blocks_axis1 * bs, 3)
    return jnp.transpose(Xs, (0, 3, 1, 2))


if __name__ == "__main__":
    # Small shapes consistent with the module: CIFAR-like NCHW, 3 channels.
    N, C, H, W = 2, 3, 16, 16
    block_size = 8
    seed = 0

    x = jax.random.uniform(
        jax.random.PRNGKey(0), (N, C, H, W), dtype=jnp.float32
    )

    model = ShuffleJAX(block_size=block_size, height=H, width=W, seed=seed)

    # Encrypt (forward)
    y = jax.block_until_ready(model(x, decrypt=False))
    assert y.shape == (N, C, H, W)

    # Validate against pure-JAX gather reference (exact permutation => exact match).
    y_ref = jax.block_until_ready(_reference_forward(model, x, decrypt=False))
    assert jnp.allclose(y, y_ref, atol=0.0, rtol=0.0), "encrypt mismatch"

    # Decrypt round-trip must recover the input exactly.
    x_rec = jax.block_until_ready(model(y, decrypt=True))
    assert jnp.allclose(x_rec, x, atol=0.0, rtol=0.0), "decrypt round-trip mismatch"

    # bf16 path (dtype-polymorphic P; a one-hot permutation is exact in bf16).
    xb = x.astype(jnp.bfloat16)
    yb = jax.block_until_ready(model(xb, decrypt=False))
    yb_ref = jax.block_until_ready(_reference_forward(model, xb, decrypt=False))
    assert jnp.array_equal(yb, yb_ref), "bf16 encrypt mismatch"

    print("KERNEL_OK")
</pallas_src>

<mosaic_0001>
module attributes {stable_mosaic.version = 11 : i64} {
  func.func @shuffle_kernel(%arg0: i32, %arg1: memref<8x192xf32, #tpu.memory_space<vmem>>, %arg2: memref<192x192xf32, #tpu.memory_space<vmem>>, %arg3: memref<8x192xf32, #tpu.memory_space<vmem>>) attributes {dimension_semantics = [#tpu.dimension_semantics<parallel>], iteration_bounds = array<i64: 1>, scalar_prefetch = 0 : i64, scratch_operands = 0 : i64, tpu.core_type = #tpu.core_type<tc>, window_params = [{transform_indices = @transform_0, window_bounds = array<i64: 8, 192>}, {pipeline_mode = #tpu.pipeline_mode<synchronous>, transform_indices = @transform_1, window_bounds = array<i64: 192, 192>}, {transform_indices = @transform_2, window_bounds = array<i64: 8, 192>}]} {
    %c0 = arith.constant 0 : index
    %c0_0 = arith.constant 0 : index
    %0 = vector.load %arg1[%c0, %c0_0] : memref<8x192xf32, #tpu.memory_space<vmem>>, vector<8x192xf32>
    %c0_1 = arith.constant 0 : index
    %c0_2 = arith.constant 0 : index
    %1 = vector.load %arg2[%c0_1, %c0_2] : memref<192x192xf32, #tpu.memory_space<vmem>>, vector<192x192xf32>
    %cst = arith.constant dense<0.000000e+00> : vector<8x192xf32>
    %2 = tpu.matmul %0, %1, %cst {dimension_numbers = #tpu.dot_dimension_numbers<[1], [0], [0], [1], [0, 0, 1, 1], [], []>} : vector<8x192xf32>, vector<192x192xf32>, vector<8x192xf32> -> vector<8x192xf32>
    %c0_3 = arith.constant 0 : index
    %c0_4 = arith.constant 0 : index
    %3 = vector.load %arg3[%c0_3, %c0_4] : memref<8x192xf32, #tpu.memory_space<vmem>>, vector<8x192xf32>
    tpu.vector_store %arg3[%c0_3, %c0_4], %2 {strides = array<i32>} : memref<8x192xf32, #tpu.memory_space<vmem>>, vector<8x192xf32>,
    return
  }
  func.func @transform_0(%arg0: i32) -> (i32, i32) {
    %c0_i32 = arith.constant 0 : i32
    %c0_i32_0 = arith.constant 0 : i32
    return %arg0, %c0_i32 : i32, i32
  }
  func.func @transform_1(%arg0: i32) -> (i32, i32) {
    %c0_i32 = arith.constant 0 : i32
    %c0_i32_0 = arith.constant 0 : i32
    %c0_i32_1 = arith.constant 0 : i32
    return %c0_i32, %c0_i32_0 : i32, i32
  }
  func.func @transform_2(%arg0: i32) -> (i32, i32) {
    %c0_i32 = arith.constant 0 : i32
    %c0_i32_0 = arith.constant 0 : i32
    return %arg0, %c0_i32 : i32, i32
  }
}

</mosaic_0001>

<bundles_post_ra>
// kernel: tpu_custom_call.1
= control target key start
LH: loop header
LB: loop body
LE: loop exit
PB: predicated region body
PF: predicated region fallthrough
CT: control target
= control target key end

     0   :  { %7 = vsyncpa [#allocation3], 0  ;;  %s313_s0 = inlined_call_operand.hbm [shape: f32[8,192], index: 0, kind: input, shape index: {}]   ;;  %s314_s1 = inlined_call_operand.hbm [shape: f32[192,192], index: 1, kind: input, shape index: {}]   ;;  %s315_s2 = inlined_call_operand.hbm [shape: f32[8,192], index: 2, kind: output, shape index: {}]  }
   0x1   :  { %8 = vsyncpa [#allocation6], 0 }
   0x2   :  { %9 = vsyncpa [#allocation4], 0  ;;  %s15_s11 = sshll.u32 %s313_s0, 4  ;;  %s281_s12 = smov [#allocation2]   ;;  %s16_s11 = int_to_ptr.hbm [resolvable:$true] %s15_s11 }
   0x3   :  { %s17_s13 = sshll.u32 %s281_s12, 4  ;;  %s25_s16 = sshll.u32 %s314_s1, 4  ;;  %s18_s13 = int_to_ptr.vmem [resolvable:$true] %s17_s13  ;;  %s26_s16 = int_to_ptr.hbm [resolvable:$true] %s25_s16 }
   0x4   :  { %20 = dma.hbm_to_vmem [thread:$0]  %s16_s11, 256, %s18_s13, [#allocation3]  }
   0x5   :  { %s282_s17 = smov [#allocation5]   ;;  %s283_s19 = smov 256  }
   0x6   :  { %s27_s18 = sshll.u32 %s282_s17, 4  ;;  %s284_s20 = smov 16   ;;  %s28_s18 = int_to_ptr.vmem [resolvable:$true] %s27_s18 }
   0x7   :  { %33 = dma.hbm_to_vmem [thread:$0]  %s26_s16, 6144, %s28_s18, [#allocation6], %s283_s19, %s283_s19, %s284_s20  }
   0x8   :  { %275 = dma.done.wait [#allocation3], 256  }
   0x9   :  { %276 = vsyncadd [#allocation3], 4294967040 }
   0xa   :  { %277 = dma.done.wait [#allocation6], 6144  }
   0xb   :  { %278 = vsyncadd [#allocation6], 4294961152  ;;  %v75_v0 = vld [vmem:[#allocation5 + $0xf8] sm:$0xff]  ;;  %v73_v1 = vld [vmem:[#allocation5 + $0xe8] sm:$0xff]  ;;  %vm92_vm0 = vcmask 523264   ;;  %s285_s0 = smov [#allocation7]  }
   0xc   :  { %136 = vmatpush.msra.mxu2 %v75_v0  ;;  %v74_v2 = vld [vmem:[#allocation5 + $0xf0] sm:$0xff]  ;;  %v72_v3 = vld [vmem:[#allocation5 + $0xe0] sm:$0xff]  ;;  %v71_v4 = vld [vmem:[#allocation5 + $0xd8] sm:$0xff]  ;;  %s183_s1 = sshll.u32 %s285_s0, 4  ;;  %s185_s23 = sshll.u32 %s315_s2, 4  ;;  %s184_s1 = int_to_ptr.vmem [resolvable:$true] %s183_s1  ;;  %s186_s23 = int_to_ptr.hbm [resolvable:$true] %s185_s23 }
   0xd   :  { %96 = vmatpush.msra.mxu0 %v74_v2  ;;  %v70_v5 = vld [vmem:[#allocation5 + $0xd0] sm:$0xff]  ;;  %v69_v6 = vld [vmem:[#allocation5 + $0xc8] sm:$0xff]  ;;  %v68_v7 = vld [vmem:[#allocation5 + $0xc0] sm:$0xff] }
   0xe   :  { %137 = vmatpush.msra.mxu2 %v73_v1  ;;  %v91_v8 = vld [vmem:[#allocation5 + $0x178] sm:$0xff]  ;;  %v89_v10 = vld [vmem:[#allocation5 + $0x168] sm:$0xff]  ;;  %v66_v11 = vld [vmem:[#allocation5 + $0xb0] sm:$0xff] }
   0xf   :  { %97 = vmatpush.msra.mxu0 %v72_v3  ;;  %v67_v9 = vld [vmem:[#allocation5 + $0xb8] sm:$0xff]  ;;  %164 = vmatpush.msra.mxu3 %v91_v8  ;;  %v90_v13 = vld [vmem:[#allocation5 + $0x170] sm:$0xff]  ;;  %v65_v14 = vld [vmem:[#allocation5 + $0xa8] sm:$0xff] }
  0x10   :  { %138 = vmatpush.msra.mxu2 %v71_v4  ;;  %v87_v12 = vld [vmem:[#allocation5 + $0x158] sm:$0xff]  ;;  %v64_v15 = vld [vmem:[#allocation5 + $0xa0] sm:$0xff]  ;;  %124 = vmatpush.msra.mxu1 %v90_v13  ;;  %v85_v16 = vld [vmem:[#allocation5 + $0x148] sm:$0xff] }
  0x11   :  { %98 = vmatpush.msra.mxu0 %v70_v5  ;;  %165 = vmatpush.msra.mxu3 %v89_v10  ;;  %v88_v17 = vld [vmem:[#allocation5 + $0x160] sm:$0xff]  ;;  %v63_v18 = vld [vmem:[#allocation5 + $0x98] sm:$0xff]  ;;  %v86_v19 = vld [vmem:[#allocation5 + $0x150] sm:$0xff] }
  0x12   :  { %139 = vmatpush.msra.mxu2 %v69_v6  ;;  %v62_v20 = vld [vmem:[#allocation5 + $0x90] sm:$0xff]  ;;  %125 = vmatpush.msra.mxu1 %v88_v17  ;;  %v83_v21 = vld [vmem:[#allocation5 + $0x138] sm:$0xff]  ;;  %v61_v22 = vld [vmem:[#allocation5 + $0x88] sm:$0xff] }
  0x13   :  { %99 = vmatpush.msra.mxu0 %v68_v7  ;;  %166 = vmatpush.msra.mxu3 %v87_v12  ;;  %v84_v23 = vld [vmem:[#allocation5 + $0x140] sm:$0xff]  ;;  %v81_v25 = vld [vmem:[#allocation5 + $0x128] sm:$0xff]  ;;  %v59_v26 = vld [vmem:[#allocation5 + $0x78] sm:$0xff] }
  0x14   :  { %140 = vmatpush.msra.mxu2 %v67_v9  ;;  %v60_v24 = vld [vmem:[#allocation5 + $0x80] sm:$0xff]  ;;  %126 = vmatpush.msra.mxu1 %v86_v19  ;;  %v82_v27 = vld [vmem:[#allocation5 + $0x130] sm:$0xff]  ;;  %v79_v29 = vld [vmem:[#allocation5 + $0x118] sm:$0xff] }
  0x15   :  { %100 = vmatpush.msra.mxu0 %v66_v11  ;;  %167 = vmatpush.msra.mxu3 %v85_v16  ;;  %v58_v28 = vld [vmem:[#allocation5 + $0x70] sm:$0xff]  ;;  %v57_v30 = vld [vmem:[#allocation5 + $0x68] sm:$0xff]  ;;  %v80_v31 = vld [vmem:[#allocation5 + $0x120] sm:$0xff] }
  0x16   :  { %141 = vmatpush.msra.mxu2 %v65_v14  ;;  %127 = vmatpush.msra.mxu1 %v84_v23  ;;  %v56_v32 = vld [vmem:[#allocation5 + $0x60] sm:$0xff]  ;;  %v77_v33 = vld [vmem:[#allocation5 + $0x108] sm:$0xff]  ;;  %v55_v34 = vld [vmem:[#allocation5 + $0x58] sm:$0xff] }
  0x17   :  { %101 = vmatpush.msra.mxu0 %v64_v15  ;;  %168 = vmatpush.msra.mxu3 %v83_v21  ;;  %v43_v35 = vld [vmem:[#allocation2 + $0x8] sm:$0xff]  ;;  %v54_v36 = vld [vmem:[#allocation5 + $0x50] sm:$0xff]  ;;  %v53_v38 = vld [vmem:[#allocation5 + $0x48] sm:$0xff] }
  0x18   :  { %142 = vmatpush.msra.mxu2 %v63_v18  ;;  %128 = vmatpush.msra.mxu1 %v82_v27  ;;  %v78_v37 = vld [vmem:[#allocation5 + $0x110] sm:$0xff]  ;;  %v52_v39 = vld [vmem:[#allocation5 + $0x40] sm:$0xff]  ;;  %v51_v41 = vld [vmem:[#allocation5 + $0x38] sm:$0xff] }
  0x19   :  { %102 = vmatpush.msra.mxu0 %v62_v20  ;;  %169 = vmatpush.msra.mxu3 %v81_v25  ;;  %v76_v40 = vld [vmem:[#allocation5 + $0x100] sm:$0xff]  ;;  %v50_v42 = vld [vmem:[#allocation5 + $0x30] sm:$0xff]  ;;  %v49_v43 = vld [vmem:[#allocation5 + $0x28] sm:$0xff] }
  0x1a   :  { %143 = vmatpush.msra.mxu2 %v61_v22  ;;  %129 = vmatpush.msra.mxu1 %v80_v31  ;;  %v48_v44 = vld [vmem:[#allocation5 + $0x20] sm:$0xff]  ;;  %v47_v45 = vld [vmem:[#allocation5 + $0x18] sm:$0xff]  ;;  %v46_v46 = vld [vmem:[#allocation5 + $0x10] sm:$0xff] }
  0x1b   :  { %103 = vmatpush.msra.mxu0 %v60_v24  ;;  %170 = vmatpush.msra.mxu3 %v79_v29  ;;  %v45_v47 = vld [vmem:[#allocation5 + $0x8] sm:$0xff]  ;;  %v42_v48 = vld [vmem:[#allocation2] sm:$0xff]  ;;  %v44_v49 = vld [vmem:[#allocation5] sm:$0xff] }
  0x1c   :  { %144 = vmatpush.msra.mxu2 %v59_v26  ;;  %130 = vmatpush.msra.mxu1 %v78_v37 }
  0x1d   :  { %104 = vmatpush.msra.mxu0 %v58_v28  ;;  %171 = vmatpush.msra.mxu3 %v77_v33 }
  0x1e   :  { %145 = vmatpush.msra.mxu2 %v57_v30  ;;  %197 = vmatmul.msk.f32.vlgmr.msra.gmra.mxu3 %vm92_vm0, %v43_v35 }
  0x1f   :  { %105 = vmatpush.msra.mxu0 %v56_v32  ;;  %131 = vmatpush.msra.mxu1 %v76_v40 }
  0x20   :  { %146 = vmatpush.msra.mxu2 %v55_v34  ;;  %196 = vmatmul.msk.f32.vlgmr.msra.gmra.mxu1 %vm92_vm0, %v43_v35 }
  0x21   :  { %106 = vmatpush.msra.mxu0 %v54_v36 }
  0x22   :  { %147 = vmatpush.msra.mxu2 %v53_v38 }
  0x23   :  { %107 = vmatpush.msra.mxu0 %v52_v39 }
  0x24   :  { %148 = vmatpush.msra.mxu2 %v51_v41 }
  0x25   :  { %108 = vmatpush.msra.mxu0 %v50_v42 }
  0x26   :  { %149 = vmatpush.msra.mxu2 %v49_v43 }
  0x27   :  { %109 = vmatpush.msra.mxu0 %v48_v44 }
  0x28   :  { %150 = vmatpush.msra.mxu2 %v47_v45 }
  0x29   :  { %110 = vmatpush.msra.mxu0 %v46_v46 }
  0x2a   :  { %151 = vmatpush.msra.mxu2 %v45_v47 }
  0x2b   :  { %152 = vmatmul.f32.vlgmr.msra.gmra.mxu2 %v42_v48  ;;  %111 = vmatpush.msra.mxu0 %v44_v49 }
  0x2c   :  { %112 = vmatmul.f32.vlgmr.msra.gmra.mxu0 %v42_v48 }
  0x9d   :  { %v133_v50 = vpop.f32.mrf.mxu1 }
  0xa1   :  { %v173_v53 = vpop.f32.mrf.mxu3 }
  0xa9   :  { %v113_v51 = vpop.f32.mrf.mxu0 }
  0xaa   :  { %v134_v52 = vadd.f32 %v133_v50, %v113_v51 }
  0xac   :  { %176 = vst [vmem:[#allocation7] sm:$0xff] %v134_v52 }
  0xae   :  { %v153_v54 = vpop.f32.mrf.mxu2 }
  0xaf   :  { %v174_v55 = vadd.f32 %v173_v53, %v153_v54 }
  0xb1   :  { %177 = vst.msk [vmem:[#allocation7 + $0x8] sm:$0xff] %vm92_vm0, %v174_v55 }
  0xb2   :  { %188 = dma.vmem_to_hbm [thread:$0]  %s184_s1, 256, %s186_s23, [#allocation4]  }
  0xb3   :  { %279 = dma.done.wait [#allocation4], 256  }
  0xb4   :  { %280 = vsyncadd [#allocation4], 4294967040 }
  0xb5   :  { %193 = vsyncpa [#allocation3], 1 }
  0xb6   :  { %194 = vsyncpa [#allocation6], 1 }
  0xb7   :  { %195 = vsyncpa [#allocation4], 1 }

</bundles_post_ra>
